<compile_context>
chip_gen: v6e
topology: v6e:2x2x1
jax: 0.10.0
libtpu: 0.0.40
codegen_flags: <defaults>
</compile_context>

<pallas_src>
import jax
import jax.numpy as jnp
from jax.experimental import pallas as pl
from jax.experimental.pallas import tpu as pltpu


def _error_cell_kernel(pred_ref, targ_ref, out_ref):
    """One grid step.

    pred_ref/targ_ref: (1, BR, L) VMEM tiles (flattened element space)
    out_ref:           (1, 2, BR, L) VMEM tile
                       out[:, 0] = relu(target - prediction)
                       out[:, 1] = relu(prediction - target)
    """
    d = targ_ref[...] - pred_ref[...]                      # (1, BR, L)
    zero = jnp.zeros((), dtype=d.dtype)
    out_ref[:, 0:1, :, :] = jnp.maximum(d, zero)[:, None, :, :]
    out_ref[:, 1:2, :, :] = jnp.maximum(-d, zero)[:, None, :, :]


def _choose_layout(chw: int, itemsize: int):
    """Pick a lane-dense (R, L) factorization of C*H*W and a row-block size."""
    lane = None
    # Prefer a lane width that is a multiple of 128 AND leaves >= 8 rows
    # (sublane-dense blocks).
    for cand in (1024, 512, 256, 128):
        if chw % cand == 0 and chw // cand >= 8:
            lane = cand
            break
    if lane is None:
        for cand in (1024, 512, 256, 128):
            if chw % cand == 0:
                lane = cand
                break
    if lane is None:
        lane = chw                     # full-extent lane dim (tiling rule: ==dim)
    rows = chw // lane

    # Target ~1 MiB per input block; keep BR a multiple of 8 (or full extent).
    target_rows = max(1, (1 << 20) // (lane * itemsize))
    if rows <= target_rows:
        block_rows = rows              # full extent -> always legal
    else:
        block_rows = max(8, (target_rows // 8) * 8)
        block_rows = min(block_rows, rows)
    return lane, rows, block_rows


@jax.jit
def error_cell(prediction: jax.Array, target: jax.Array) -> jax.Array:
    """Pallas ErrorCell forward. Inputs are NCHW, output is (N, 2C, H, W)."""
    assert prediction.shape == target.shape, "prediction/target shape mismatch"
    assert prediction.dtype == target.dtype
    n, c, h, w = prediction.shape
    chw = c * h * w
    itemsize = jnp.dtype(prediction.dtype).itemsize

    lane, rows, br = _choose_layout(chw, itemsize)

    # Contiguous (free) reshapes into a lane-dense element-space view.
    p3 = prediction.reshape(n, rows, lane)
    t3 = target.reshape(n, rows, lane)

    grid = (n, pl.cdiv(rows, br))

    out4 = pl.pallas_call(
        _error_cell_kernel,
        out_shape=jax.ShapeDtypeStruct((n, 2, rows, lane), prediction.dtype),
        grid=grid,
        in_specs=[
            pl.BlockSpec((1, br, lane), lambda i, j: (i, j, 0)),
            pl.BlockSpec((1, br, lane), lambda i, j: (i, j, 0)),
        ],
        out_specs=pl.BlockSpec((1, 2, br, lane), lambda i, j: (i, 0, j, 0)),
        compiler_params=pltpu.CompilerParams(
            dimension_semantics=("parallel", "parallel"),
        ),
        cost_estimate=pl.CostEstimate(
            flops=3 * n * chw,                       # sub + 2x max per element
            transcendentals=0,
            bytes_accessed=4 * n * chw * itemsize,   # read 2x, write 2x
        ),
    )(p3, t3)

    # (N, 2, R, L) -> (N, 2C, H, W): contiguous, free reshape.
    return out4.reshape(n, 2 * c, h, w)


if __name__ == "__main__":
    key = jax.random.PRNGKey(0)
    k_pred, k_targ = jax.random.split(key)

    # Small NCHW shapes consistent with the module's usage.
    n, c, h, w = 2, 4, 16, 16
    prediction = jax.random.normal(k_pred, (n, c, h, w), dtype=jnp.float32)
    target = jax.random.normal(k_targ, (n, c, h, w), dtype=jnp.float32)

    errors = jax.block_until_ready(error_cell(prediction, target))

    # Reference check against plain JAX (same semantics as the PyTorch module).
    ref = jnp.maximum(
        jnp.concatenate([target - prediction, prediction - target], axis=1), 0.0
    )
    assert errors.shape == (n, 2 * c, h, w)
    assert jnp.allclose(errors, ref, atol=1e-6), "mismatch vs reference"

    print("KERNEL_OK")
</pallas_src>

<mosaic_0001>
module attributes {stable_mosaic.version = 11 : i64} {
  func.func @_error_cell_kernel(%arg0: i32, %arg1: i32, %arg2: memref<1x8x128xf32, #tpu.memory_space<vmem>>, %arg3: memref<1x8x128xf32, #tpu.memory_space<vmem>>, %arg4: memref<1x2x8x128xf32, #tpu.memory_space<vmem>>) attributes {dimension_semantics = [#tpu.dimension_semantics<parallel>, #tpu.dimension_semantics<parallel>], iteration_bounds = array<i64: 2, 1>, scalar_prefetch = 0 : i64, scratch_operands = 0 : i64, tpu.core_type = #tpu.core_type<tc>, window_params = [{transform_indices = @transform_0, window_bounds = array<i64: 1, 8, 128>}, {transform_indices = @transform_1, window_bounds = array<i64: 1, 8, 128>}, {transform_indices = @transform_2, window_bounds = array<i64: 1, 2, 8, 128>}]} {
    %c0 = arith.constant 0 : index
    %c0_0 = arith.constant 0 : index
    %c0_1 = arith.constant 0 : index
    %0 = vector.load %arg3[%c0, %c0_0, %c0_1] : memref<1x8x128xf32, #tpu.memory_space<vmem>>, vector<1x8x128xf32>
    %c0_2 = arith.constant 0 : index
    %c0_3 = arith.constant 0 : index
    %c0_4 = arith.constant 0 : index
    %1 = vector.load %arg2[%c0_2, %c0_3, %c0_4] : memref<1x8x128xf32, #tpu.memory_space<vmem>>, vector<1x8x128xf32>
    %2 = arith.subf %0, %1 : vector<1x8x128xf32>
    %cst = arith.constant 0.000000e+00 : f32
    %3 = vector.broadcast %cst : f32 to vector<1x8x128xf32>
    %4 = arith.maximumf %2, %3 : vector<1x8x128xf32>
    %5 = vector.shape_cast %4 : vector<1x8x128xf32> to vector<1x1x8x128xf32>
    %c0_5 = arith.constant 0 : index
    %c0_6 = arith.constant 0 : index
    %c0_7 = arith.constant 0 : index
    %c0_8 = arith.constant 0 : index
    %6 = vector.load %arg4[%c0_5, %c0_6, %c0_7, %c0_8] : memref<1x2x8x128xf32, #tpu.memory_space<vmem>>, vector<1x1x8x128xf32>
    tpu.vector_store %arg4[%c0_5, %c0_6, %c0_7, %c0_8], %5 {strides = array<i32>} : memref<1x2x8x128xf32, #tpu.memory_space<vmem>>, vector<1x1x8x128xf32>,
    %cst_9 = arith.constant 0.000000e+00 : f32
    %7 = vector.broadcast %cst_9 : f32 to vector<1x8x128xf32>
    %8 = arith.subf %7, %2 : vector<1x8x128xf32>
    %cst_10 = arith.constant 0.000000e+00 : f32
    %9 = vector.broadcast %cst_10 : f32 to vector<1x8x128xf32>
    %10 = arith.maximumf %8, %9 : vector<1x8x128xf32>
    %11 = vector.shape_cast %10 : vector<1x8x128xf32> to vector<1x1x8x128xf32>
    %c0_11 = arith.constant 0 : index
    %c1 = arith.constant 1 : index
    %c0_12 = arith.constant 0 : index
    %c0_13 = arith.constant 0 : index
    %12 = vector.load %arg4[%c0_11, %c1, %c0_12, %c0_13] : memref<1x2x8x128xf32, #tpu.memory_space<vmem>>, vector<1x1x8x128xf32>
    tpu.vector_store %arg4[%c0_11, %c1, %c0_12, %c0_13], %11 {strides = array<i32>} : memref<1x2x8x128xf32, #tpu.memory_space<vmem>>, vector<1x1x8x128xf32>,
    return
  }
  func.func @transform_0(%arg0: i32, %arg1: i32) -> (i32, i32, i32) {
    %c0_i32 = arith.constant 0 : i32
    %c0_i32_0 = arith.constant 0 : i32
    return %arg0, %arg1, %c0_i32 : i32, i32, i32
  }
  func.func @transform_1(%arg0: i32, %arg1: i32) -> (i32, i32, i32) {
    %c0_i32 = arith.constant 0 : i32
    %c0_i32_0 = arith.constant 0 : i32
    return %arg0, %arg1, %c0_i32 : i32, i32, i32
  }
  func.func @transform_2(%arg0: i32, %arg1: i32) -> (i32, i32, i32, i32) {
    %c0_i32 = arith.constant 0 : i32
    %c0_i32_0 = arith.constant 0 : i32
    %c0_i32_1 = arith.constant 0 : i32
    return %arg0, %c0_i32, %arg1, %c0_i32_0 : i32, i32, i32, i32
  }
}

</mosaic_0001>

<bundles_post_ra>
// kernel: error_cell.1
= control target key start
LH: loop header
LB: loop body
LE: loop exit
PB: predicated region body
PF: predicated region fallthrough
CT: control target
= control target key end

     0   :  { %s380_s9 = smov 0   ;;  %s382_s10 = smov 0   ;;  %s404_s0 = inlined_call_operand.vmem [shape: f32[2,8,128], index: 0, kind: input, shape index: {}]   ;;  %s405_s1 = inlined_call_operand.vmem [shape: f32[2,8,128], index: 1, kind: input, shape index: {}]   ;;  %s406_s2 = inlined_call_operand.vmem [shape: f32[2,2,8,128], index: 2, kind: output, shape index: {}]  }
   0x1   :  { %s384_s11 = smov 0  }
   0x2 LB: > { %s24_s12 = sadd.s32 1, %s359_s10  ;;  %p308_p0 = scmp.ge.s32.totalorder %s363_s11, 1  ;;  %s363_s11 = sphi %s384_s11, %s12_s11   ;;  %s359_s10 = sphi %s382_s10, %s408_s10   ;;  %s355_s9 = sphi %s380_s9, %s407_s9  }
   0x3   : > { %p26_p1 = scmp.ge.s32.totalorder %s24_s12, 2  ;;  %p144_p2 = scmp.lt.s32.totalorder %s363_s11, 3 }
   0x5   : > { %s410_s12 = smov (%p26_p1, %s24_s12), 0  ;;  %p145_p3 = pnand %p308_p0, %p144_p2 }
   0x6   : > { %p178_p4 = scmp.lt.s32.totalorder (!%p145_p3), %s355_s9, 1 }
   0x7   : > { %148 = sbr.rel (%p145_p3) target bundleno = 24 (0x18), region = 28 }
   0xc   : > { %s412_s9 = smov (!%p178_p4, %s355_s9), 1 }
   0xd   : > { %s309_s13 = sshll.u32 %s412_s9, 3  ;;  %s316_s14 = sshll.u32 %s412_s9, 4 }
   0xe   : > { %s184_s17 = scalar_lea.vmem %s404_s0, %s309_s13  ;;  %s191_s20 = scalar_lea.vmem %s405_s1, %s309_s13 }
   0xf   : > { %v200_v0 = vld [vmem:[%s191_s20] sm:$0xff]  ;;  %s199_s23 = scalar_lea.vmem %s406_s2, %s316_s14 }
  0x10   : > { %v201_v1 = vld [vmem:[%s184_s17] sm:$0xff] }
  0x11   : > { %v202_v2 = vsub.f32 %v200_v0, %v201_v1 }
  0x13   : > { %v203_v3 = vmax.f32 %v202_v2, 0.0  ;;  %v205_v4 = vsub.f32 0.0, %v202_v2 }
  0x15   : > { %204 = vst [vmem:[%s199_s23] sm:$0xff] %v203_v3  ;;  %v206_v5 = vmax.f32 %v205_v4, 0.0 }
  0x17   : > { %313 = vst [vmem:[%s199_s23 + $0x8] sm:$0xff] %v206_v5 }
  0x18 PF: > { %s12_s11 = sadd.s32 1, %s363_s11   ;;  %s407_s9 = smov %s359_s10 }
  0x19   : > { %p9_p5 = scmp.ge.s32.totalorder %s12_s11, 4   ;;  %s408_s10 = smov %s410_s12 }
  0x1b   :  { %11 = sbr.rel (!%p9_p5) target bundleno = 2 (0x2), region = 62 }

</bundles_post_ra>
